<compile_context>
chip_gen: v6e
topology: v6e:2x2x1
jax: 0.10.0
libtpu: 0.0.40
codegen_flags: <defaults>
</compile_context>

<pallas_src>
import functools

import jax
import jax.numpy as jnp
from jax.experimental import pallas as pl
from jax.experimental.pallas import tpu as pltpu

LANE = 128


def _round_up(n, m):
    return pl.cdiv(n, m) * m


def gconv_kernel(x_ref, adj_ref, w_ref, b_ref, out_ref, *, activate):
    """One GraphConvolution layer on a row tile: out = act(adj_tile @ (x @ W) + b)."""
    # support = x_full @ W   (bf16 MXU operands, f32 accumulation)
    support = jnp.dot(x_ref[...], w_ref[...], preferred_element_type=jnp.float32)
    # z = adj_row_tile @ support + b
    z = jnp.dot(adj_ref[...], support.astype(jnp.bfloat16),
                preferred_element_type=jnp.float32)
    z = z + b_ref[...]
    if activate:
        # tanhshrink(x) = x - tanh(x); tanh runs on the EUP, subtract on the VPU (f32).
        z = z - jnp.tanh(z)
    # TODO(synk): stochastic dropout via pltpu.prng_random_bits for training mode
    # (F.dropout with training=False is the identity, so nothing to do at inference).
    out_ref[...] = z.astype(out_ref.dtype)


def graph_convolution(x, adj, w, b, *, activate, out_dtype, tm):
    """Row-tiled pallas_call for one layer.

    x:   (N_pad, K)     bf16, K a multiple of 128 (features zero-padded)
    adj: (N_pad, N_pad) bf16
    w:   (K, 128)       bf16, zero-padded to the 128-lane slab
    b:   (1, 128)       f32,  zero-padded
    out: (N_pad, 128)   out_dtype
    """
    n_pad, k = x.shape
    grid = (n_pad // tm,)
    kernel = functools.partial(gconv_kernel, activate=activate)
    return pl.pallas_call(
        kernel,
        out_shape=jax.ShapeDtypeStruct((n_pad, LANE), out_dtype),
        grid_spec=pltpu.PrefetchScalarGridSpec(
            num_scalar_prefetch=0,
            grid=grid,
            in_specs=[
                pl.BlockSpec((n_pad, k), lambda i: (0, 0)),    # x: resident across tiles
                pl.BlockSpec((tm, n_pad), lambda i: (i, 0)),   # adj: streamed row tiles
                pl.BlockSpec((k, LANE), lambda i: (0, 0)),     # W: resident
                pl.BlockSpec((1, LANE), lambda i: (0, 0)),     # b: resident
            ],
            out_specs=pl.BlockSpec((tm, LANE), lambda i: (i, 0)),  # lane-dense stores
        ),
        compiler_params=pltpu.CompilerParams(
            dimension_semantics=("parallel",),   # shard row tiles across TCs (v7x megacore)
        ),
    )(x, adj, w, b)


def gcn_forward(x, adj, params, *, tm=128):
    """Full MyGCN_v2 forward.  params = [(W1, b1), ..., (W6, b6)] in natural shapes."""
    n, nfeat = x.shape
    nout = params[-1][0].shape[1]
    n_pad = _round_up(n, tm)
    k0 = _round_up(nfeat, LANE)

    # Zero-pad to lane-dense slabs and cast MXU operands to bf16 (f32 accumulation
    # happens inside the kernel).  Zero-padded feature columns stay exactly zero
    # through every layer because the padded weight/bias columns are zero and
    # tanhshrink(0) == 0, so slicing at the end recovers the exact narrow result.
    x_p = (jnp.zeros((n_pad, k0), jnp.float32)
           .at[:n, :nfeat].set(x).astype(jnp.bfloat16))
    adj_p = (jnp.zeros((n_pad, n_pad), jnp.float32)
             .at[:n, :n].set(adj).astype(jnp.bfloat16))

    h = x_p
    k_in = k0
    n_layers = len(params)
    for li, (w, b) in enumerate(params):
        fin, fout = w.shape
        w_p = (jnp.zeros((k_in, LANE), jnp.float32)
               .at[:fin, :fout].set(w).astype(jnp.bfloat16))
        b_p = jnp.zeros((1, LANE), jnp.float32).at[:, :fout].set(b)
        last = li == n_layers - 1
        h = graph_convolution(
            h, adj_p, w_p, b_p,
            activate=not last,
            out_dtype=jnp.float32 if last else jnp.bfloat16,
            tm=tm,
        )
        k_in = LANE
    return h[:n, :nout]


def init_gc_params(key, in_features, out_features):
    # Matches pygcn GraphConvolution.reset_parameters: U(-stdv, stdv),
    # stdv = 1 / sqrt(out_features), for both weight and bias.
    kw, kb = jax.random.split(key)
    stdv = 1.0 / (out_features ** 0.5)
    w = jax.random.uniform(kw, (in_features, out_features), jnp.float32,
                           minval=-stdv, maxval=stdv)
    b = jax.random.uniform(kb, (1, out_features), jnp.float32,
                           minval=-stdv, maxval=stdv)
    return w, b


if __name__ == "__main__":
    key = jax.random.PRNGKey(0)
    k_x, k_adj, *k_layers = jax.random.split(key, 8)

    N, NFEAT, NOUT = 256, 64, 4
    TM = 128
    widths = [NFEAT, 12, 10, 8, 6, 4, NOUT]   # MyGCN_v2 layer widths

    x = jax.random.normal(k_x, (N, NFEAT), jnp.float32)

    # Symmetric, row-normalized dense adjacency (A + I, then D^-1 A).
    a = (jax.random.uniform(k_adj, (N, N)) < 0.05).astype(jnp.float32)
    a = jnp.maximum(a, a.T) + jnp.eye(N, dtype=jnp.float32)
    adj = a / jnp.sum(a, axis=1, keepdims=True)

    params = [init_gc_params(k_layers[i], widths[i], widths[i + 1])
              for i in range(6)]

    run = jax.jit(functools.partial(gcn_forward, tm=TM))
    out = run(x, adj, params)
    jax.block_until_ready(out)

    # Pure-JAX reference: f32 math on the same bf16-rounded operands (i.e. the
    # kernel's precision policy); remaining delta comes only from in-kernel
    # bf16 rounding of the support matrix and accumulation order.
    def bf(v):
        return v.astype(jnp.bfloat16).astype(jnp.float32)

    h_ref = bf(x)
    adj_r = bf(adj)
    for li, (w, b) in enumerate(params):
        z = adj_r @ (h_ref @ bf(w)) + b
        h_ref = z if li == len(params) - 1 else bf(z - jnp.tanh(z))
    ref = h_ref

    assert out.shape == (N, NOUT)
    assert jnp.allclose(out, ref, atol=2e-3, rtol=2e-2), "mismatch vs reference"

    print("KERNEL_OK")
</pallas_src>

<mosaic_0001>
module attributes {stable_mosaic.version = 11 : i64} {
  func.func @gconv_kernel(%arg0: i32, %arg1: memref<256x128xbf16, #tpu.memory_space<vmem>>, %arg2: memref<128x256xbf16, #tpu.memory_space<vmem>>, %arg3: memref<128x128xbf16, #tpu.memory_space<vmem>>, %arg4: memref<1x128xf32, #tpu.memory_space<vmem>>, %arg5: memref<128x128xbf16, #tpu.memory_space<vmem>>) attributes {dimension_semantics = [#tpu.dimension_semantics<parallel>], iteration_bounds = array<i64: 2>, scalar_prefetch = 0 : i64, scratch_operands = 0 : i64, tpu.core_type = #tpu.core_type<tc>, window_params = [{pipeline_mode = #tpu.pipeline_mode<synchronous>, transform_indices = @transform_0, window_bounds = array<i64: 256, 128>}, {transform_indices = @transform_1, window_bounds = array<i64: 128, 256>}, {pipeline_mode = #tpu.pipeline_mode<synchronous>, transform_indices = @transform_2, window_bounds = array<i64: 128, 128>}, {pipeline_mode = #tpu.pipeline_mode<synchronous>, transform_indices = @transform_3, window_bounds = array<i64: 1, 128>}, {transform_indices = @transform_4, window_bounds = array<i64: 128, 128>}]} {
    %c0 = arith.constant 0 : index
    %c0_0 = arith.constant 0 : index
    %0 = vector.load %arg1[%c0, %c0_0] : memref<256x128xbf16, #tpu.memory_space<vmem>>, vector<256x128xbf16>
    %c0_1 = arith.constant 0 : index
    %c0_2 = arith.constant 0 : index
    %1 = vector.load %arg3[%c0_1, %c0_2] : memref<128x128xbf16, #tpu.memory_space<vmem>>, vector<128x128xbf16>
    %cst = arith.constant dense<0.000000e+00> : vector<256x128xf32>
    %2 = tpu.matmul %0, %1, %cst {dimension_numbers = #tpu.dot_dimension_numbers<[1], [0], [0], [1], [0, 0, 1, 1], [], []>} : vector<256x128xbf16>, vector<128x128xbf16>, vector<256x128xf32> -> vector<256x128xf32>
    %c0_3 = arith.constant 0 : index
    %c0_4 = arith.constant 0 : index
    %3 = vector.load %arg2[%c0_3, %c0_4] : memref<128x256xbf16, #tpu.memory_space<vmem>>, vector<128x256xbf16>
    %4 = arith.truncf %2 : vector<256x128xf32> to vector<256x128xbf16>
    %cst_5 = arith.constant dense<0.000000e+00> : vector<128x128xf32>
    %5 = tpu.matmul %3, %4, %cst_5 {dimension_numbers = #tpu.dot_dimension_numbers<[1], [0], [0], [1], [0, 0, 1, 1], [], []>} : vector<128x256xbf16>, vector<256x128xbf16>, vector<128x128xf32> -> vector<128x128xf32>
    %c0_6 = arith.constant 0 : index
    %c0_7 = arith.constant 0 : index
    %6 = vector.load %arg4[%c0_6, %c0_7] : memref<1x128xf32, #tpu.memory_space<vmem>>, vector<1x128xf32>
    %7 = vector.broadcast %6 : vector<1x128xf32> to vector<128x128xf32>
    %8 = arith.addf %5, %7 : vector<128x128xf32>
    %9 = math.tanh %8 : vector<128x128xf32>
    %10 = arith.subf %8, %9 : vector<128x128xf32>
    %11 = arith.truncf %10 : vector<128x128xf32> to vector<128x128xbf16>
    %c0_8 = arith.constant 0 : index
    %c0_9 = arith.constant 0 : index
    %12 = vector.load %arg5[%c0_8, %c0_9] : memref<128x128xbf16, #tpu.memory_space<vmem>>, vector<128x128xbf16>
    tpu.vector_store %arg5[%c0_8, %c0_9], %11 {strides = array<i32>} : memref<128x128xbf16, #tpu.memory_space<vmem>>, vector<128x128xbf16>,
    return
  }
  func.func @transform_0(%arg0: i32) -> (i32, i32) {
    %c0_i32 = arith.constant 0 : i32
    %c0_i32_0 = arith.constant 0 : i32
    %c0_i32_1 = arith.constant 0 : i32
    return %c0_i32, %c0_i32_0 : i32, i32
  }
  func.func @transform_1(%arg0: i32) -> (i32, i32) {
    %c0_i32 = arith.constant 0 : i32
    %c0_i32_0 = arith.constant 0 : i32
    return %arg0, %c0_i32 : i32, i32
  }
  func.func @transform_2(%arg0: i32) -> (i32, i32) {
    %c0_i32 = arith.constant 0 : i32
    %c0_i32_0 = arith.constant 0 : i32
    %c0_i32_1 = arith.constant 0 : i32
    return %c0_i32, %c0_i32_0 : i32, i32
  }
  func.func @transform_3(%arg0: i32) -> (i32, i32) {
    %c0_i32 = arith.constant 0 : i32
    %c0_i32_0 = arith.constant 0 : i32
    %c0_i32_1 = arith.constant 0 : i32
    return %c0_i32, %c0_i32_0 : i32, i32
  }
  func.func @transform_4(%arg0: i32) -> (i32, i32) {
    %c0_i32 = arith.constant 0 : i32
    %c0_i32_0 = arith.constant 0 : i32
    return %arg0, %c0_i32 : i32, i32
  }
}

module attributes {stable_mosaic.version = 11 : i64} {
  func.func @gconv_kernel(%arg0: i32, %arg1: memref<256x128xbf16, #tpu.memory_space<vmem>>, %arg2: memref<128x256xbf16, #tpu.memory_space<vmem>>, %arg3: memref<128x128xbf16, #tpu.memory_space<vmem>>, %arg4: memref<1x128xf32, #tpu.memory_space<vmem>>, %arg5: memref<128x128xf32, #tpu.memory_space<vmem>>) attributes {dimension_semantics = [#tpu.dimension_semantics<parallel>], iteration_bounds = array<i64: 2>, scalar_prefetch = 0 : i64, scratch_operands = 0 : i64, tpu.core_type = #tpu.core_type<tc>, window_params = [{pipeline_mode = #tpu.pipeline_mode<synchronous>, transform_indices = @transform_0, window_bounds = array<i64: 256, 128>}, {transform_indices = @transform_1, window_bounds = array<i64: 128, 256>}, {pipeline_mode = #tpu.pipeline_mode<synchronous>, transform_indices = @transform_2, window_bounds = array<i64: 128, 128>}, {pipeline_mode = #tpu.pipeline_mode<synchronous>, transform_indices = @transform_3, window_bounds = array<i64: 1, 128>}, {transform_indices = @transform_4, window_bounds = array<i64: 128, 128>}]} {
    %c0 = arith.constant 0 : index
    %c0_0 = arith.constant 0 : index
    %0 = vector.load %arg1[%c0, %c0_0] : memref<256x128xbf16, #tpu.memory_space<vmem>>, vector<256x128xbf16>
    %c0_1 = arith.constant 0 : index
    %c0_2 = arith.constant 0 : index
    %1 = vector.load %arg3[%c0_1, %c0_2] : memref<128x128xbf16, #tpu.memory_space<vmem>>, vector<128x128xbf16>
    %cst = arith.constant dense<0.000000e+00> : vector<256x128xf32>
    %2 = tpu.matmul %0, %1, %cst {dimension_numbers = #tpu.dot_dimension_numbers<[1], [0], [0], [1], [0, 0, 1, 1], [], []>} : vector<256x128xbf16>, vector<128x128xbf16>, vector<256x128xf32> -> vector<256x128xf32>
    %c0_3 = arith.constant 0 : index
    %c0_4 = arith.constant 0 : index
    %3 = vector.load %arg2[%c0_3, %c0_4] : memref<128x256xbf16, #tpu.memory_space<vmem>>, vector<128x256xbf16>
    %4 = arith.truncf %2 : vector<256x128xf32> to vector<256x128xbf16>
    %cst_5 = arith.constant dense<0.000000e+00> : vector<128x128xf32>
    %5 = tpu.matmul %3, %4, %cst_5 {dimension_numbers = #tpu.dot_dimension_numbers<[1], [0], [0], [1], [0, 0, 1, 1], [], []>} : vector<128x256xbf16>, vector<256x128xbf16>, vector<128x128xf32> -> vector<128x128xf32>
    %c0_6 = arith.constant 0 : index
    %c0_7 = arith.constant 0 : index
    %6 = vector.load %arg4[%c0_6, %c0_7] : memref<1x128xf32, #tpu.memory_space<vmem>>, vector<1x128xf32>
    %7 = vector.broadcast %6 : vector<1x128xf32> to vector<128x128xf32>
    %8 = arith.addf %5, %7 : vector<128x128xf32>
    %c0_8 = arith.constant 0 : index
    %c0_9 = arith.constant 0 : index
    %9 = vector.load %arg5[%c0_8, %c0_9] : memref<128x128xf32, #tpu.memory_space<vmem>>, vector<128x128xf32>
    tpu.vector_store %arg5[%c0_8, %c0_9], %8 {strides = array<i32>} : memref<128x128xf32, #tpu.memory_space<vmem>>, vector<128x128xf32>,
    return
  }
  func.func @transform_0(%arg0: i32) -> (i32, i32) {
    %c0_i32 = arith.constant 0 : i32
    %c0_i32_0 = arith.constant 0 : i32
    %c0_i32_1 = arith.constant 0 : i32
    return %c0_i32, %c0_i32_0 : i32, i32
  }
  func.func @transform_1(%arg0: i32) -> (i32, i32) {
    %c0_i32 = arith.constant 0 : i32
    %c0_i32_0 = arith.constant 0 : i32
    return %arg0, %c0_i32 : i32, i32
  }
  func.func @transform_2(%arg0: i32) -> (i32, i32) {
    %c0_i32 = arith.constant 0 : i32
    %c0_i32_0 = arith.constant 0 : i32
    %c0_i32_1 = arith.constant 0 : i32
    return %c0_i32, %c0_i32_0 : i32, i32
  }
  func.func @transform_3(%arg0: i32) -> (i32, i32) {
    %c0_i32 = arith.constant 0 : i32
    %c0_i32_0 = arith.constant 0 : i32
    %c0_i32_1 = arith.constant 0 : i32
    return %c0_i32, %c0_i32_0 : i32, i32
  }
  func.func @transform_4(%arg0: i32) -> (i32, i32) {
    %c0_i32 = arith.constant 0 : i32
    %c0_i32_0 = arith.constant 0 : i32
    return %arg0, %c0_i32 : i32, i32
  }
}

</mosaic_0001>

<bundles_post_ra>
// kernel: gcn_forward.6
= control target key start
LH: loop header
LB: loop body
LE: loop exit
PB: predicated region body
PF: predicated region fallthrough
CT: control target
= control target key end

     0   :  { %s1332_s15 = smov 0   ;;  %s1479_s0 = inlined_call_operand.vmem [shape: bf16[256,128], index: 0, kind: input, shape index: {}]   ;;  %s1480_s1 = inlined_call_operand.vmem [shape: bf16[256,256], index: 1, kind: input, shape index: {}]   ;;  %s1481_s2 = inlined_call_operand.vmem [shape: bf16[128,128], index: 2, kind: input, shape index: {}]   ;;  %s1482_s3 = inlined_call_operand.vmem [shape: f32[1,128], index: 3, kind: input, shape index: {}]   ;;  %s1483_s4 = inlined_call_operand.vmem [shape: bf16[256,128], index: 4, kind: output, shape index: {}]  }
   0x1 LB: > { %s942_s16 = sadd.s32 4294967295, %s1305_s15   ;;  %p946_p0 = scmp.ge.s32.totalorder %s1305_s15, 1  ;;  %s1305_s15 = sphi %s1332_s15, %s14_s15  }
   0x2   : > { %p164_p1 = scmp.lt.s32.totalorder %s1305_s15, 3 }
   0x4   : > { %p165_p2 = pnand %p946_p0, %p164_p1 }
   0x5   : > { %s947_s17 = sshll.u32 (!%p165_p2), %s942_s16, 4 }
   0x6   : > { %168 = sbr.rel (%p165_p2) target bundleno = 609 (0x261), region = 36  ;;  %p192_p3 = scmp.lt.s32.totalorder (!%p165_p2), %s947_s17, 31 }
   0xb   : > { %v1219_v0 = vld [vmem:[%s1481_s2 + $0x38] sm:$0xff]   ;;  %v1220_v1 = vld [vmem:[%s1481_s2 + $0x30] sm:$0xff]   ;;  %v1221_v2 = vld [vmem:[%s1481_s2 + $0x28] sm:$0xff]   ;;  %s1485_s17 = smov (!%p192_p3, %s947_s17), 31 }
   0xc   : > { %1163 = vmatprep.subr.bf16.mxu0 %v1219_v0  ;;  %v1222_v3 = vld [vmem:[%s1481_s2 + $0x20] sm:$0xff]   ;;  %v1223_v5 = vld [vmem:[%s1481_s2 + $0x18] sm:$0xff]   ;;  %v1224_v6 = vld [vmem:[%s1481_s2 + $0x10] sm:$0xff]   ;;  %s1011_s18 = sshll.u32 %s1485_s17, 3  ;;  %s951_s23 = sshll.u32 %s1485_s17, 2 }
   0xd   : > { %1164 = vmatpush3.bf16.msra.mxu0 %v1219_v0  ;;  %v1227_v4 = vld [vmem:[%s1479_s0] sm:$0xff]   ;;  %v1225_v7 = vld [vmem:[%s1481_s2 + $0x8] sm:$0xff]   ;;  %v1229_v10 = vld [vmem:[%s1479_s0 + $0x10] sm:$0xff]   ;;  %s1420_s21 = scalar_lea.vmem %s1480_s1, %s1011_s18  ;;  %s1456_s26 = scalar_lea.vmem %s1483_s4, %s951_s23 }
   0xe   : > { %1165 = vmatprep.subr.bf16.mxu0 %v1220_v1  ;;  %1179 = vmatprep.mubr.bf16.mxu0 %v1227_v4  ;;  %v1226_v8 = vld [vmem:[%s1481_s2] sm:$0xff]   ;;  %v1228_v9 = vld [vmem:[%s1479_s0 + $0x8] sm:$0xff]   ;;  %v1230_v11 = vld [vmem:[%s1479_s0 + $0x18] sm:$0xff]  }
   0xf   : > { %v1231_v12 = vld [vmem:[%s1479_s0 + $0x20] sm:$0xff]   ;;  %v1232_v13 = vld [vmem:[%s1479_s0 + $0x28] sm:$0xff]   ;;  %v1233_v14 = vld [vmem:[%s1479_s0 + $0x30] sm:$0xff]  }
  0x10   : > { %v1234_v15 = vld [vmem:[%s1479_s0 + $0x38] sm:$0xff]   ;;  %v1235_v16 = vld [vmem:[%s1479_s0 + $0x40] sm:$0xff]   ;;  %v1236_v17 = vld [vmem:[%s1479_s0 + $0x48] sm:$0xff]  }
  0x11   : > { %1166 = vmatpush3.bf16.msra.mxu0 %v1220_v1  ;;  %v1237_v18 = vld [vmem:[%s1479_s0 + $0x50] sm:$0xff]   ;;  %v1238_v19 = vld [vmem:[%s1479_s0 + $0x58] sm:$0xff]   ;;  %v1239_v20 = vld [vmem:[%s1479_s0 + $0x60] sm:$0xff]  }
  0x12   : > { %1167 = vmatprep.subr.bf16.mxu0 %v1221_v2  ;;  %v1240_v21 = vld [vmem:[%s1479_s0 + $0x68] sm:$0xff]   ;;  %v1241_v22 = vld [vmem:[%s1479_s0 + $0x70] sm:$0xff]   ;;  %v1242_v23 = vld [vmem:[%s1479_s0 + $0x78] sm:$0xff]  }
  0x13   : > { %v1245_v24 = vld [vmem:[%s1420_s21 + $0x4] ss:$8 sps:$4 sm:$0xff]  }
  0x14   : > { %709 = vmatprep.mubr.bf16.mxu1 %v1245_v24 }
  0x15   : > { %1168 = vmatpush3.bf16.msra.mxu0 %v1221_v2 }
  0x16   : > { %1169 = vmatprep.subr.bf16.mxu0 %v1222_v3 }
  0x19   : > { %1170 = vmatpush3.bf16.msra.mxu0 %v1222_v3 }
  0x1a   : > { %1171 = vmatprep.subr.bf16.mxu0 %v1223_v5 }
  0x1d   : > { %1172 = vmatpush3.bf16.msra.mxu0 %v1223_v5 }
  0x1e   : > { %1173 = vmatprep.subr.bf16.mxu0 %v1224_v6 }
  0x21   : > { %1174 = vmatpush3.bf16.msra.mxu0 %v1224_v6 }
  0x22   : > { %1175 = vmatprep.subr.bf16.mxu0 %v1225_v7 }
  0x25   : > { %1176 = vmatpush3.bf16.msra.mxu0 %v1225_v7 }
  0x26   : > { %1177 = vmatprep.subr.bf16.mxu0 %v1226_v8 }
  0x29   : > { %1178 = vmatpush3.bf16.msra.mxu0 %v1226_v8 }
  0x2c   : > { %1180 = vmatmul.mubr.bf16.vlgmr.msra.gmra.mxu0 %v1228_v9  ;;  %v1243_v9 = vld [vmem:[%s1420_s21] ss:$8 sps:$4 sm:$0xff]  }
  0x2d   : > { %1183 = vmatprep.mubr.bf16.mxu0 %v1229_v10  ;;  %v1246_v10 = vld [vmem:[%s1420_s21 + $0x14] ss:$8 sps:$4 sm:$0xff]  }
  0x34   : > { %1184 = vmatmul.mubr.bf16.gmra.mxu0 %v1230_v11  ;;  %v1248_v11 = vld [vmem:[%s1420_s21 + $0x10] ss:$8 sps:$4 sm:$0xff]  }
  0x35   : > { %1187 = vmatprep.mubr.bf16.mxu0 %v1231_v12  ;;  %v1249_v12 = vld [vmem:[%s1420_s21 + $0x24] ss:$8 sps:$4 sm:$0xff]  }
  0x3c   : > { %1188 = vmatmul.mubr.bf16.gmra.mxu0 %v1232_v13  ;;  %v1251_v13 = vld [vmem:[%s1420_s21 + $0x20] ss:$8 sps:$4 sm:$0xff]  }
  0x3d   : > { %1191 = vmatprep.mubr.bf16.mxu0 %v1233_v14  ;;  %v1252_v14 = vld [vmem:[%s1420_s21 + $0x34] ss:$8 sps:$4 sm:$0xff]  }
  0x44   : > { %1192 = vmatmul.mubr.bf16.gmra.mxu0 %v1234_v15  ;;  %v1254_v15 = vld [vmem:[%s1420_s21 + $0x30] ss:$8 sps:$4 sm:$0xff]  }
  0x45   : > { %1195 = vmatprep.mubr.bf16.mxu0 %v1235_v16  ;;  %v1255_v16 = vld [vmem:[%s1420_s21 + $0x44] ss:$8 sps:$4 sm:$0xff]  }
  0x4c   : > { %1196 = vmatmul.mubr.bf16.gmra.mxu0 %v1236_v17  ;;  %v1257_v17 = vld [vmem:[%s1420_s21 + $0x40] ss:$8 sps:$4 sm:$0xff]  }
  0x4d   : > { %1199 = vmatprep.mubr.bf16.mxu0 %v1237_v18  ;;  %v1258_v18 = vld [vmem:[%s1420_s21 + $0x54] ss:$8 sps:$4 sm:$0xff]  }
  0x54   : > { %1200 = vmatmul.mubr.bf16.gmra.mxu0 %v1238_v19  ;;  %v1260_v19 = vld [vmem:[%s1420_s21 + $0x50] ss:$8 sps:$4 sm:$0xff]  }
  0x55   : > { %1203 = vmatprep.mubr.bf16.mxu0 %v1239_v20  ;;  %v1261_v20 = vld [vmem:[%s1420_s21 + $0x64] ss:$8 sps:$4 sm:$0xff]  }
  0x5c   : > { %1204 = vmatmul.mubr.bf16.gmra.mxu0 %v1240_v21  ;;  %v1263_v21 = vld [vmem:[%s1420_s21 + $0x60] ss:$8 sps:$4 sm:$0xff]  }
  0x5d   : > { %1207 = vmatprep.mubr.bf16.mxu0 %v1241_v22  ;;  %v1264_v22 = vld [vmem:[%s1420_s21 + $0x74] ss:$8 sps:$4 sm:$0xff]  }
  0x64   : > { %1208 = vmatmul.mubr.bf16.gmra.mxu0 %v1242_v23  ;;  %v1266_v23 = vld [vmem:[%s1420_s21 + $0x70] ss:$8 sps:$4 sm:$0xff]  }
  0xec   : > { %v1181_v25 = vpop.f32.mrf.mxu0 }
  0xee   : > { %v1423_v26 = vpop.f32.mrf.mxu0 }
  0xf0   : > { %v1182_v27 = vpop.f32.mrf.mxu0 }
  0xf1   : > { %v575_v28 = vpack.c.bf16 %v1182_v27, %v1181_v25  ;;  %v1444_v25 = vld [vmem:[%s1482_s3] ss:$0 sm:$0xff] }
  0xf2   : > { %v434_v29 = vpop.f32.mrf.mxu0 }
  0xf3   : > { %v574_v30 = vpack.c.bf16 %v434_v29, %v1423_v26 }
  0xf4   : > { %v1185_v31 = vpop.f32.mrf.mxu0 }
  0xf6   : > { %v447_v32 = vpop.f32.mrf.mxu0 }
  0xf8   : > { %v1186_v33 = vpop.f32.mrf.mxu0 }
  0xf9   : > { %v577_v34 = vpack.c.bf16 %v1186_v33, %v1185_v31 }
  0xfa   : > { %v450_v35 = vpop.f32.mrf.mxu0 }
  0xfb   : > { %v576_v36 = vpack.c.bf16 %v450_v35, %v447_v32 }
  0xfc   : > { %v1189_v37 = vpop.f32.mrf.mxu0 }
  0xfe   : > { %v463_v38 = vpop.f32.mrf.mxu0 }
 0x100   : > { %v1190_v39 = vpop.f32.mrf.mxu0 }
 0x101   : > { %v579_v2 = vpack.c.bf16 %v1190_v39, %v1189_v37 }
 0x102   : > { %v466_v40 = vpop.f32.mrf.mxu0 }
 0x103   : > { %v578_v4 = vpack.c.bf16 %v466_v40, %v463_v38 }
 0x104   : > { %v1193_v41 = vpop.f32.mrf.mxu0 }
 0x106   : > { %v479_v42 = vpop.f32.mrf.mxu0 }
 0x108   : > { %v1194_v43 = vpop.f32.mrf.mxu0 }
 0x109   : > { %v581_v61 = vpack.c.bf16 %v1194_v43, %v1193_v41 }
 0x10a   : > { %v482_v44 = vpop.f32.mrf.mxu0 }
 0x10b   : > { %v580_v0 = vpack.c.bf16 %v482_v44, %v479_v42 }
 0x10c   : > { %v1197_v45 = vpop.f32.mrf.mxu0 }
 0x10e   : > { %v495_v46 = vpop.f32.mrf.mxu0 }
 0x110   : > { %v1198_v47 = vpop.f32.mrf.mxu0 }
 0x111   : > { %v583_v7 = vpack.c.bf16 %v1198_v47, %v1197_v45 }
 0x112   : > { %v498_v48 = vpop.f32.mrf.mxu0 }
 0x113   : > { %v582_v8 = vpack.c.bf16 %v498_v48, %v495_v46 }
 0x114   : > { %v1201_v49 = vpop.f32.mrf.mxu0 }
 0x116   : > { %v511_v50 = vpop.f32.mrf.mxu0 }
 0x118   : > { %v1202_v51 = vpop.f32.mrf.mxu0 }
 0x119   : > { %v585_v5 = vpack.c.bf16 %v1202_v51, %v1201_v49 }
 0x11a   : > { %v514_v52 = vpop.f32.mrf.mxu0 }
 0x11b   : > { %v584_v6 = vpack.c.bf16 %v514_v52, %v511_v50 }
 0x11c   : > { %v1205_v53 = vpop.f32.mrf.mxu0 }
 0x11e   : > { %v527_v54 = vpop.f32.mrf.mxu0 }
 0x120   : > { %v1206_v55 = vpop.f32.mrf.mxu0 }
 0x121   : > { %v587_v1 = vpack.c.bf16 %v1206_v55, %v1205_v53 }
 0x122   : > { %v530_v56 = vpop.f32.mrf.mxu0 }
 0x123   : > { %v586_v3 = vpack.c.bf16 %v530_v56, %v527_v54 }
 0x124   : > { %v1209_v57 = vpop.f32.mrf.mxu0 }
 0x126   : > { %v543_v58 = vpop.f32.mrf.mxu0 }
 0x128   : > { %v1210_v59 = vpop.f32.mrf.mxu0 }
 0x129   : > { %v589_v60 = vpack.c.bf16 %v1210_v59, %v1209_v57 }
 0x12a   : > { %v546_v62 = vpop.f32.mrf.mxu0 }
 0x12b   : > { %v588_v63 = vpack.c.bf16 %v546_v62, %v543_v58  ;;  %1099 = vmatprep.subr.bf16.mxu1 %v589_v60 }
 0x12c   : > { %1100 = vmatpush3.bf16.msra.mxu1 %v581_v61 }
 0x12d   : > { %1101 = vmatprep.subr.bf16.mxu1 %v588_v63 }
 0x130   : > { %1102 = vmatpush3.bf16.msra.mxu1 %v580_v0 }
 0x131   : > { %1103 = vmatprep.subr.bf16.mxu1 %v587_v1 }
 0x134   : > { %1104 = vmatpush3.bf16.msra.mxu1 %v579_v2 }
 0x135   : > { %1105 = vmatprep.subr.bf16.mxu1 %v586_v3 }
 0x138   : > { %1106 = vmatpush3.bf16.msra.mxu1 %v578_v4 }
 0x139   : > { %1107 = vmatprep.subr.bf16.mxu1 %v585_v5 }
 0x13c   : > { %1108 = vmatpush3.bf16.msra.mxu1 %v577_v34 }
 0x13d   : > { %1109 = vmatprep.subr.bf16.mxu1 %v584_v6 }
 0x140   : > { %1110 = vmatpush3.bf16.msra.mxu1 %v576_v36 }
 0x141   : > { %1111 = vmatprep.subr.bf16.mxu1 %v583_v7 }
 0x144   : > { %1112 = vmatpush3.bf16.msra.mxu1 %v575_v28 }
 0x145   : > { %1113 = vmatprep.subr.bf16.mxu1 %v582_v8 }
 0x148   : > { %1114 = vmatpush3.bf16.msra.mxu1 %v574_v30 }
 0x14b   : > { %710 = vmatmul.mubr.bf16.vlgmr.msra.gmra.mxu1 %v1243_v9 }
 0x14c   : > { %717 = vmatprep.mubr.bf16.mxu1 %v1246_v10 }
 0x153   : > { %718 = vmatmul.mubr.bf16.gmra.mxu1 %v1248_v11 }
 0x154   : > { %725 = vmatprep.mubr.bf16.mxu1 %v1249_v12 }
 0x15b   : > { %726 = vmatmul.mubr.bf16.gmra.mxu1 %v1251_v13 }
 0x15c   : > { %733 = vmatprep.mubr.bf16.mxu1 %v1252_v14 }
 0x163   : > { %734 = vmatmul.mubr.bf16.gmra.mxu1 %v1254_v15 }
 0x164   : > { %741 = vmatprep.mubr.bf16.mxu1 %v1255_v16 }
 0x16b   : > { %742 = vmatmul.mubr.bf16.gmra.mxu1 %v1257_v17 }
 0x16c   : > { %749 = vmatprep.mubr.bf16.mxu1 %v1258_v18 }
 0x173   : > { %750 = vmatmul.mubr.bf16.gmra.mxu1 %v1260_v19 }
 0x174   : > { %757 = vmatprep.mubr.bf16.mxu1 %v1261_v20 }
 0x17b   : > { %758 = vmatmul.mubr.bf16.gmra.mxu1 %v1263_v21 }
 0x17c   : > { %765 = vmatprep.mubr.bf16.mxu1 %v1264_v22 }
 0x183   : > { %766 = vmatmul.mubr.bf16.gmra.mxu1 %v1266_v23 }
 0x20b   : > { %v1115_v24 = vpop.f32.mrf.mxu1 }
 0x20d   : > { %v1116_v26 = vpop.f32.mrf.mxu1 }
 0x20e   : > { %v1117_v27 = vadd.f32 %v1116_v26, %v1115_v24 }
 0x20f   : > { %v1118_v28 = vpop.f32.mrf.mxu1 }
 0x210   : > { %v712_v29 = vadd.f32 %v1117_v27, %v1444_v25 }
 0x211   : > { %v1119_v30 = vpop.f32.mrf.mxu1 }
 0x212   : > { %v1120_v31 = vadd.f32 %v1119_v30, %v1118_v28  ;;  %1267 = vtanh.f32 %v712_v29 }
 0x213   : > { %v1121_v32 = vpop.f32.mrf.mxu1 }
 0x214   : > { %v715_v33 = vadd.f32 %v1120_v31, %v1444_v25 }
 0x215   : > { %v1122_v34 = vpop.f32.mrf.mxu1 }
 0x216   : > { %1269 = vtanh.f32 %v715_v33  ;;  %v1123_v35 = vadd.f32 %v1122_v34, %v1121_v32 }
 0x217   : > { %v1124_v36 = vpop.f32.mrf.mxu1 }
 0x218   : > { %v720_v37 = vadd.f32 %v1123_v35, %v1444_v25 }
 0x219   : > { %v1125_v38 = vpop.f32.mrf.mxu1 }
 0x21a   : > { %v1126_v39 = vadd.f32 %v1125_v38, %v1124_v36  ;;  %1271 = vtanh.f32 %v720_v37 }
 0x21b   : > { %v1127_v40 = vpop.f32.mrf.mxu1 }
 0x21c   : > { %v723_v41 = vadd.f32 %v1126_v39, %v1444_v25 }
 0x21d   : > { %v1128_v42 = vpop.f32.mrf.mxu1 }
 0x21e   : > { %1273 = vtanh.f32 %v723_v41  ;;  %v1129_v43 = vadd.f32 %v1128_v42, %v1127_v40 }
 0x21f   : > { %v1130_v44 = vpop.f32.mrf.mxu1  ;;  %v1268_v46 = vpop.eup %1267 }
 0x220   : > { %v728_v45 = vadd.f32 %v1129_v43, %v1444_v25  ;;  %v790_v51 = vsub.f32 %v712_v29, %v1268_v46 }
 0x221   : > { %v1131_v47 = vpop.f32.mrf.mxu1 }
 0x222   : > { %v1132_v48 = vadd.f32 %v1131_v47, %v1130_v44  ;;  %1275 = vtanh.f32 %v728_v45 }
 0x223   : > { %v1270_v49 = vpop.eup %1269  ;;  %v1133_v50 = vpop.f32.mrf.mxu1 }
 0x224   : > { %v791_v52 = vsub.f32 %v715_v33, %v1270_v49  ;;  %v731_v53 = vadd.f32 %v1132_v48, %v1444_v25 }
 0x225   : > { %v1134_v54 = vpop.f32.mrf.mxu1 }
 0x226   : > { %v1031_v55 = vpack.c.bf16 %v791_v52, %v790_v51  ;;  %1277 = vtanh.f32 %v731_v53  ;;  %v1135_v56 = vadd.f32 %v1134_v54, %v1133_v50 }
 0x227   : > { %v1136_v57 = vpop.f32.mrf.mxu1  ;;  %v1272_v59 = vpop.eup %1271 }
 0x228   : > { %1032 = vst [vmem:[%s1456_s26] sm:$0xff] %v1031_v55   ;;  %v736_v58 = vadd.f32 %v1135_v56, %v1444_v25  ;;  %v792_v0 = vsub.f32 %v720_v37, %v1272_v59 }
 0x229   : > { %v1137_v60 = vpop.f32.mrf.mxu1 }
 0x22a   : > { %v1138_v61 = vadd.f32 %v1137_v60, %v1136_v57  ;;  %1279 = vtanh.f32 %v736_v58 }
 0x22b   : > { %v1274_v62 = vpop.eup %1273  ;;  %v1139_v63 = vpop.f32.mrf.mxu1 }
 0x22c   : > { %v793_v1 = vsub.f32 %v723_v41, %v1274_v62  ;;  %v739_v2 = vadd.f32 %v1138_v61, %v1444_v25 }
 0x22d   : > { %v1140_v3 = vpop.f32.mrf.mxu1 }
 0x22e   : > { %v1036_v4 = vpack.c.bf16 %v793_v1, %v792_v0  ;;  %1281 = vtanh.f32 %v739_v2  ;;  %v1141_v5 = vadd.f32 %v1140_v3, %v1139_v63 }
 0x22f   : > { %v1142_v6 = vpop.f32.mrf.mxu1  ;;  %v1276_v8 = vpop.eup %1275 }
 0x230   : > { %1068 = vst [vmem:[%s1456_s26 + $0x8] sm:$0xff] %v1036_v4   ;;  %v744_v7 = vadd.f32 %v1141_v5, %v1444_v25  ;;  %v794_v13 = vsub.f32 %v728_v45, %v1276_v8 }
 0x231   : > { %v1143_v9 = vpop.f32.mrf.mxu1 }
 0x232   : > { %v1144_v10 = vadd.f32 %v1143_v9, %v1142_v6  ;;  %1283 = vtanh.f32 %v744_v7 }
 0x233   : > { %v1278_v11 = vpop.eup %1277  ;;  %v1145_v12 = vpop.f32.mrf.mxu1 }
 0x234   : > { %v795_v14 = vsub.f32 %v731_v53, %v1278_v11  ;;  %v747_v15 = vadd.f32 %v1144_v10, %v1444_v25 }
 0x235   : > { %v1146_v16 = vpop.f32.mrf.mxu1 }
 0x236   : > { %v1041_v17 = vpack.c.bf16 %v795_v14, %v794_v13  ;;  %1285 = vtanh.f32 %v747_v15  ;;  %v1147_v18 = vadd.f32 %v1146_v16, %v1145_v12 }
 0x237   : > { %v1148_v19 = vpop.f32.mrf.mxu1  ;;  %v1280_v21 = vpop.eup %1279 }
 0x238   : > { %1069 = vst [vmem:[%s1456_s26 + $0x10] sm:$0xff] %v1041_v17   ;;  %v752_v20 = vadd.f32 %v1147_v18, %v1444_v25  ;;  %v796_v27 = vsub.f32 %v736_v58, %v1280_v21 }
 0x239   : > { %v1149_v22 = vpop.f32.mrf.mxu1 }
 0x23a   : > { %v1150_v23 = vadd.f32 %v1149_v22, %v1148_v19  ;;  %1287 = vtanh.f32 %v752_v20 }
 0x23b   : > { %v1282_v24 = vpop.eup %1281  ;;  %v1151_v26 = vpop.f32.mrf.mxu1 }
 0x23c   : > { %v797_v28 = vsub.f32 %v739_v2, %v1282_v24  ;;  %v755_v29 = vadd.f32 %v1150_v23, %v1444_v25 }
 0x23d   : > { %v1152_v30 = vpop.f32.mrf.mxu1 }
 0x23e   : > { %v1046_v31 = vpack.c.bf16 %v797_v28, %v796_v27  ;;  %1289 = vtanh.f32 %v755_v29  ;;  %v1153_v32 = vadd.f32 %v1152_v30, %v1151_v26 }
 0x23f   : > { %v1154_v33 = vpop.f32.mrf.mxu1  ;;  %v1284_v35 = vpop.eup %1283 }
 0x240   : > { %1070 = vst [vmem:[%s1456_s26 + $0x18] sm:$0xff] %v1046_v31   ;;  %v760_v34 = vadd.f32 %v1153_v32, %v1444_v25  ;;  %v798_v40 = vsub.f32 %v744_v7, %v1284_v35 }
 0x241   : > { %v1155_v36 = vpop.f32.mrf.mxu1 }
 0x242   : > { %v1156_v37 = vadd.f32 %v1155_v36, %v1154_v33  ;;  %1291 = vtanh.f32 %v760_v34 }
 0x243   : > { %v1286_v38 = vpop.eup %1285  ;;  %v1157_v39 = vpop.f32.mrf.mxu1 }
 0x244   : > { %v799_v41 = vsub.f32 %v747_v15, %v1286_v38  ;;  %v763_v42 = vadd.f32 %v1156_v37, %v1444_v25 }
 0x245   : > { %v1158_v43 = vpop.f32.mrf.mxu1 }
 0x246   : > { %v1051_v44 = vpack.c.bf16 %v799_v41, %v798_v40  ;;  %1293 = vtanh.f32 %v763_v42  ;;  %v1159_v45 = vadd.f32 %v1158_v43, %v1157_v39 }
 0x247   : > { %v1160_v46 = vpop.f32.mrf.mxu1  ;;  %v1288_v48 = vpop.eup %1287 }
 0x248   : > { %1071 = vst [vmem:[%s1456_s26 + $0x20] sm:$0xff] %v1051_v44   ;;  %v768_v47 = vadd.f32 %v1159_v45, %v1444_v25  ;;  %v800_v52 = vsub.f32 %v752_v20, %v1288_v48 }
 0x249   : > { %v1161_v49 = vpop.f32.mrf.mxu1 }
 0x24a   : > { %v1162_v50 = vadd.f32 %v1161_v49, %v1160_v46  ;;  %1295 = vtanh.f32 %v768_v47 }
 0x24b   : > { %v1290_v51 = vpop.eup %1289 }
 0x24c   : > { %v801_v53 = vsub.f32 %v755_v29, %v1290_v51  ;;  %v771_v54 = vadd.f32 %v1162_v50, %v1444_v25 }
 0x24e   : > { %v1056_v55 = vpack.c.bf16 %v801_v53, %v800_v52  ;;  %1297 = vtanh.f32 %v771_v54 }
 0x24f   : > { %v1292_v56 = vpop.eup %1291 }
 0x250   : > { %1072 = vst [vmem:[%s1456_s26 + $0x28] sm:$0xff] %v1056_v55   ;;  %v802_v58 = vsub.f32 %v760_v34, %v1292_v56 }
 0x253   : > { %v1294_v57 = vpop.eup %1293 }
 0x254   : > { %v803_v59 = vsub.f32 %v763_v42, %v1294_v57 }
 0x256   : > { %v1061_v60 = vpack.c.bf16 %v803_v59, %v802_v58 }
 0x257   : > { %v1296_v61 = vpop.eup %1295 }
 0x258   : > { %1073 = vst [vmem:[%s1456_s26 + $0x30] sm:$0xff] %v1061_v60   ;;  %v804_v63 = vsub.f32 %v768_v47, %v1296_v61 }
 0x25b   : > { %v1298_v62 = vpop.eup %1297 }
 0x25c   : > { %v805_v0 = vsub.f32 %v771_v54, %v1298_v62 }
 0x25e   : > { %v1066_v1 = vpack.c.bf16 %v805_v0, %v804_v63 }
 0x260   : > { %1074 = vst [vmem:[%s1456_s26 + $0x38] sm:$0xff] %v1066_v1  }
 0x261 PF: > { %s14_s15 = sadd.s32 1, %s1305_s15  }
 0x262   : > { %p11_p4 = scmp.ge.s32.totalorder %s14_s15, 4  }
 0x264   :  { %13 = sbr.rel (!%p11_p4) target bundleno = 1 (0x1), region = 66 }

// kernel: gcn_forward.11
= control target key start
LH: loop header
LB: loop body
LE: loop exit
PB: predicated region body
PF: predicated region fallthrough
CT: control target
= control target key end

     0   :  { %s1125_s15 = smov 0   ;;  %s1283_s0 = inlined_call_operand.vmem [shape: bf16[256,128], index: 0, kind: input, shape index: {}]   ;;  %s1284_s1 = inlined_call_operand.vmem [shape: bf16[256,256], index: 1, kind: input, shape index: {}]   ;;  %s1285_s2 = inlined_call_operand.vmem [shape: bf16[128,128], index: 2, kind: input, shape index: {}]   ;;  %s1286_s3 = inlined_call_operand.vmem [shape: f32[1,128], index: 3, kind: input, shape index: {}]   ;;  %s1287_s4 = inlined_call_operand.vmem [shape: f32[256,128], index: 4, kind: output, shape index: {}]  }
   0x1 LB: > { %s846_s16 = sadd.s32 4294967295, %s1098_s15   ;;  %p850_p0 = scmp.ge.s32.totalorder %s1098_s15, 1  ;;  %s1098_s15 = sphi %s1125_s15, %s14_s15  }
   0x2   : > { %p164_p1 = scmp.lt.s32.totalorder %s1098_s15, 3 }
   0x4   : > { %p165_p2 = pnand %p850_p0, %p164_p1 }
   0x5   : > { %s851_s17 = sshll.u32 (!%p165_p2), %s846_s16, 4 }
   0x6   : > { %168 = sbr.rel (%p165_p2) target bundleno = 591 (0x24f), region = 36  ;;  %p192_p3 = scmp.lt.s32.totalorder (!%p165_p2), %s851_s17, 31 }
   0xb   : > { %v1044_v0 = vld [vmem:[%s1285_s2 + $0x38] sm:$0xff]   ;;  %v1045_v1 = vld [vmem:[%s1285_s2 + $0x30] sm:$0xff]   ;;  %v1046_v2 = vld [vmem:[%s1285_s2 + $0x28] sm:$0xff]   ;;  %s1289_s17 = smov (!%p192_p3, %s851_s17), 31 }
   0xc   : > { %988 = vmatprep.subr.bf16.mxu0 %v1044_v0  ;;  %v1047_v3 = vld [vmem:[%s1285_s2 + $0x20] sm:$0xff]   ;;  %v1048_v5 = vld [vmem:[%s1285_s2 + $0x18] sm:$0xff]   ;;  %v1049_v6 = vld [vmem:[%s1285_s2 + $0x10] sm:$0xff]   ;;  %s899_s18 = sshll.u32 %s1289_s17, 3 }
   0xd   : > { %989 = vmatpush3.bf16.msra.mxu0 %v1044_v0  ;;  %v1052_v4 = vld [vmem:[%s1283_s0] sm:$0xff]   ;;  %v1050_v7 = vld [vmem:[%s1285_s2 + $0x8] sm:$0xff]   ;;  %v1054_v10 = vld [vmem:[%s1283_s0 + $0x10] sm:$0xff]   ;;  %s1215_s21 = scalar_lea.vmem %s1284_s1, %s899_s18  ;;  %s1246_s25 = scalar_lea.vmem %s1287_s4, %s899_s18 }
   0xe   : > { %990 = vmatprep.subr.bf16.mxu0 %v1045_v1  ;;  %1004 = vmatprep.mubr.bf16.mxu0 %v1052_v4  ;;  %v1051_v8 = vld [vmem:[%s1285_s2] sm:$0xff]   ;;  %v1053_v9 = vld [vmem:[%s1283_s0 + $0x8] sm:$0xff]   ;;  %v1055_v11 = vld [vmem:[%s1283_s0 + $0x18] sm:$0xff]  }
   0xf   : > { %v1056_v12 = vld [vmem:[%s1283_s0 + $0x20] sm:$0xff]   ;;  %v1057_v13 = vld [vmem:[%s1283_s0 + $0x28] sm:$0xff]   ;;  %v1058_v14 = vld [vmem:[%s1283_s0 + $0x30] sm:$0xff]  }
  0x10   : > { %v1059_v15 = vld [vmem:[%s1283_s0 + $0x38] sm:$0xff]   ;;  %v1060_v16 = vld [vmem:[%s1283_s0 + $0x40] sm:$0xff]   ;;  %v1061_v17 = vld [vmem:[%s1283_s0 + $0x48] sm:$0xff]  }
  0x11   : > { %991 = vmatpush3.bf16.msra.mxu0 %v1045_v1  ;;  %v1062_v18 = vld [vmem:[%s1283_s0 + $0x50] sm:$0xff]   ;;  %v1063_v19 = vld [vmem:[%s1283_s0 + $0x58] sm:$0xff]   ;;  %v1064_v20 = vld [vmem:[%s1283_s0 + $0x60] sm:$0xff]  }
  0x12   : > { %992 = vmatprep.subr.bf16.mxu0 %v1046_v2  ;;  %v1065_v21 = vld [vmem:[%s1283_s0 + $0x68] sm:$0xff]   ;;  %v1066_v22 = vld [vmem:[%s1283_s0 + $0x70] sm:$0xff]   ;;  %v1067_v23 = vld [vmem:[%s1283_s0 + $0x78] sm:$0xff]  }
  0x13   : > { %v1070_v24 = vld [vmem:[%s1215_s21 + $0x4] ss:$8 sps:$4 sm:$0xff]  }
  0x14   : > { %709 = vmatprep.mubr.bf16.mxu1 %v1070_v24 }
  0x15   : > { %993 = vmatpush3.bf16.msra.mxu0 %v1046_v2 }
  0x16   : > { %994 = vmatprep.subr.bf16.mxu0 %v1047_v3 }
  0x19   : > { %995 = vmatpush3.bf16.msra.mxu0 %v1047_v3 }
  0x1a   : > { %996 = vmatprep.subr.bf16.mxu0 %v1048_v5 }
  0x1d   : > { %997 = vmatpush3.bf16.msra.mxu0 %v1048_v5 }
  0x1e   : > { %998 = vmatprep.subr.bf16.mxu0 %v1049_v6 }
  0x21   : > { %999 = vmatpush3.bf16.msra.mxu0 %v1049_v6 }
  0x22   : > { %1000 = vmatprep.subr.bf16.mxu0 %v1050_v7 }
  0x25   : > { %1001 = vmatpush3.bf16.msra.mxu0 %v1050_v7 }
  0x26   : > { %1002 = vmatprep.subr.bf16.mxu0 %v1051_v8 }
  0x29   : > { %1003 = vmatpush3.bf16.msra.mxu0 %v1051_v8 }
  0x2c   : > { %1005 = vmatmul.mubr.bf16.vlgmr.msra.gmra.mxu0 %v1053_v9  ;;  %v1068_v9 = vld [vmem:[%s1215_s21] ss:$8 sps:$4 sm:$0xff]  }
  0x2d   : > { %1008 = vmatprep.mubr.bf16.mxu0 %v1054_v10  ;;  %v1071_v10 = vld [vmem:[%s1215_s21 + $0x14] ss:$8 sps:$4 sm:$0xff]  }
  0x34   : > { %1009 = vmatmul.mubr.bf16.gmra.mxu0 %v1055_v11  ;;  %v1073_v11 = vld [vmem:[%s1215_s21 + $0x10] ss:$8 sps:$4 sm:$0xff]  }
  0x35   : > { %1012 = vmatprep.mubr.bf16.mxu0 %v1056_v12  ;;  %v1074_v12 = vld [vmem:[%s1215_s21 + $0x24] ss:$8 sps:$4 sm:$0xff]  }
  0x3c   : > { %1013 = vmatmul.mubr.bf16.gmra.mxu0 %v1057_v13  ;;  %v1076_v13 = vld [vmem:[%s1215_s21 + $0x20] ss:$8 sps:$4 sm:$0xff]  }
  0x3d   : > { %1016 = vmatprep.mubr.bf16.mxu0 %v1058_v14  ;;  %v1077_v14 = vld [vmem:[%s1215_s21 + $0x34] ss:$8 sps:$4 sm:$0xff]  }
  0x44   : > { %1017 = vmatmul.mubr.bf16.gmra.mxu0 %v1059_v15  ;;  %v1079_v15 = vld [vmem:[%s1215_s21 + $0x30] ss:$8 sps:$4 sm:$0xff]  }
  0x45   : > { %1020 = vmatprep.mubr.bf16.mxu0 %v1060_v16  ;;  %v1080_v16 = vld [vmem:[%s1215_s21 + $0x44] ss:$8 sps:$4 sm:$0xff]  }
  0x4c   : > { %1021 = vmatmul.mubr.bf16.gmra.mxu0 %v1061_v17  ;;  %v1082_v17 = vld [vmem:[%s1215_s21 + $0x40] ss:$8 sps:$4 sm:$0xff]  }
  0x4d   : > { %1024 = vmatprep.mubr.bf16.mxu0 %v1062_v18  ;;  %v1083_v18 = vld [vmem:[%s1215_s21 + $0x54] ss:$8 sps:$4 sm:$0xff]  }
  0x54   : > { %1025 = vmatmul.mubr.bf16.gmra.mxu0 %v1063_v19  ;;  %v1085_v19 = vld [vmem:[%s1215_s21 + $0x50] ss:$8 sps:$4 sm:$0xff]  }
  0x55   : > { %1028 = vmatprep.mubr.bf16.mxu0 %v1064_v20  ;;  %v1086_v20 = vld [vmem:[%s1215_s21 + $0x64] ss:$8 sps:$4 sm:$0xff]  }
  0x5c   : > { %1029 = vmatmul.mubr.bf16.gmra.mxu0 %v1065_v21  ;;  %v1088_v21 = vld [vmem:[%s1215_s21 + $0x60] ss:$8 sps:$4 sm:$0xff]  }
  0x5d   : > { %1032 = vmatprep.mubr.bf16.mxu0 %v1066_v22  ;;  %v1089_v22 = vld [vmem:[%s1215_s21 + $0x74] ss:$8 sps:$4 sm:$0xff]  }
  0x64   : > { %1033 = vmatmul.mubr.bf16.gmra.mxu0 %v1067_v23  ;;  %v1091_v23 = vld [vmem:[%s1215_s21 + $0x70] ss:$8 sps:$4 sm:$0xff]  }
  0xec   : > { %v1006_v25 = vpop.f32.mrf.mxu0 }
  0xee   : > { %v1218_v26 = vpop.f32.mrf.mxu0 }
  0xf0   : > { %v1007_v27 = vpop.f32.mrf.mxu0 }
  0xf1   : > { %v575_v28 = vpack.c.bf16 %v1007_v27, %v1006_v25  ;;  %v1239_v25 = vld [vmem:[%s1286_s3] ss:$0 sm:$0xff] }
  0xf2   : > { %v434_v29 = vpop.f32.mrf.mxu0 }
  0xf3   : > { %v574_v30 = vpack.c.bf16 %v434_v29, %v1218_v26 }
  0xf4   : > { %v1010_v31 = vpop.f32.mrf.mxu0 }
  0xf6   : > { %v447_v32 = vpop.f32.mrf.mxu0 }
  0xf8   : > { %v1011_v33 = vpop.f32.mrf.mxu0 }
  0xf9   : > { %v577_v34 = vpack.c.bf16 %v1011_v33, %v1010_v31 }
  0xfa   : > { %v450_v35 = vpop.f32.mrf.mxu0 }
  0xfb   : > { %v576_v36 = vpack.c.bf16 %v450_v35, %v447_v32 }
  0xfc   : > { %v1014_v37 = vpop.f32.mrf.mxu0 }
  0xfe   : > { %v463_v38 = vpop.f32.mrf.mxu0 }
 0x100   : > { %v1015_v39 = vpop.f32.mrf.mxu0 }
 0x101   : > { %v579_v2 = vpack.c.bf16 %v1015_v39, %v1014_v37 }
 0x102   : > { %v466_v40 = vpop.f32.mrf.mxu0 }
 0x103   : > { %v578_v4 = vpack.c.bf16 %v466_v40, %v463_v38 }
 0x104   : > { %v1018_v41 = vpop.f32.mrf.mxu0 }
 0x106   : > { %v479_v42 = vpop.f32.mrf.mxu0 }
 0x108   : > { %v1019_v43 = vpop.f32.mrf.mxu0 }
 0x109   : > { %v581_v61 = vpack.c.bf16 %v1019_v43, %v1018_v41 }
 0x10a   : > { %v482_v44 = vpop.f32.mrf.mxu0 }
 0x10b   : > { %v580_v0 = vpack.c.bf16 %v482_v44, %v479_v42 }
 0x10c   : > { %v1022_v45 = vpop.f32.mrf.mxu0 }
 0x10e   : > { %v495_v46 = vpop.f32.mrf.mxu0 }
 0x110   : > { %v1023_v47 = vpop.f32.mrf.mxu0 }
 0x111   : > { %v583_v7 = vpack.c.bf16 %v1023_v47, %v1022_v45 }
 0x112   : > { %v498_v48 = vpop.f32.mrf.mxu0 }
 0x113   : > { %v582_v8 = vpack.c.bf16 %v498_v48, %v495_v46 }
 0x114   : > { %v1026_v49 = vpop.f32.mrf.mxu0 }
 0x116   : > { %v511_v50 = vpop.f32.mrf.mxu0 }
 0x118   : > { %v1027_v51 = vpop.f32.mrf.mxu0 }
 0x119   : > { %v585_v5 = vpack.c.bf16 %v1027_v51, %v1026_v49 }
 0x11a   : > { %v514_v52 = vpop.f32.mrf.mxu0 }
 0x11b   : > { %v584_v6 = vpack.c.bf16 %v514_v52, %v511_v50 }
 0x11c   : > { %v1030_v53 = vpop.f32.mrf.mxu0 }
 0x11e   : > { %v527_v54 = vpop.f32.mrf.mxu0 }
 0x120   : > { %v1031_v55 = vpop.f32.mrf.mxu0 }
 0x121   : > { %v587_v1 = vpack.c.bf16 %v1031_v55, %v1030_v53 }
 0x122   : > { %v530_v56 = vpop.f32.mrf.mxu0 }
 0x123   : > { %v586_v3 = vpack.c.bf16 %v530_v56, %v527_v54 }
 0x124   : > { %v1034_v57 = vpop.f32.mrf.mxu0 }
 0x126   : > { %v543_v58 = vpop.f32.mrf.mxu0 }
 0x128   : > { %v1035_v59 = vpop.f32.mrf.mxu0 }
 0x129   : > { %v589_v60 = vpack.c.bf16 %v1035_v59, %v1034_v57 }
 0x12a   : > { %v546_v62 = vpop.f32.mrf.mxu0 }
 0x12b   : > { %v588_v63 = vpack.c.bf16 %v546_v62, %v543_v58  ;;  %924 = vmatprep.subr.bf16.mxu1 %v589_v60 }
 0x12c   : > { %925 = vmatpush3.bf16.msra.mxu1 %v581_v61 }
 0x12d   : > { %926 = vmatprep.subr.bf16.mxu1 %v588_v63 }
 0x130   : > { %927 = vmatpush3.bf16.msra.mxu1 %v580_v0 }
 0x131   : > { %928 = vmatprep.subr.bf16.mxu1 %v587_v1 }
 0x134   : > { %929 = vmatpush3.bf16.msra.mxu1 %v579_v2 }
 0x135   : > { %930 = vmatprep.subr.bf16.mxu1 %v586_v3 }
 0x138   : > { %931 = vmatpush3.bf16.msra.mxu1 %v578_v4 }
 0x139   : > { %932 = vmatprep.subr.bf16.mxu1 %v585_v5 }
 0x13c   : > { %933 = vmatpush3.bf16.msra.mxu1 %v577_v34 }
 0x13d   : > { %934 = vmatprep.subr.bf16.mxu1 %v584_v6 }
 0x140   : > { %935 = vmatpush3.bf16.msra.mxu1 %v576_v36 }
 0x141   : > { %936 = vmatprep.subr.bf16.mxu1 %v583_v7 }
 0x144   : > { %937 = vmatpush3.bf16.msra.mxu1 %v575_v28 }
 0x145   : > { %938 = vmatprep.subr.bf16.mxu1 %v582_v8 }
 0x148   : > { %939 = vmatpush3.bf16.msra.mxu1 %v574_v30 }
 0x14b   : > { %710 = vmatmul.mubr.bf16.vlgmr.msra.gmra.mxu1 %v1068_v9 }
 0x14c   : > { %717 = vmatprep.mubr.bf16.mxu1 %v1071_v10 }
 0x153   : > { %718 = vmatmul.mubr.bf16.gmra.mxu1 %v1073_v11 }
 0x154   : > { %725 = vmatprep.mubr.bf16.mxu1 %v1074_v12 }
 0x15b   : > { %726 = vmatmul.mubr.bf16.gmra.mxu1 %v1076_v13 }
 0x15c   : > { %733 = vmatprep.mubr.bf16.mxu1 %v1077_v14 }
 0x163   : > { %734 = vmatmul.mubr.bf16.gmra.mxu1 %v1079_v15 }
 0x164   : > { %741 = vmatprep.mubr.bf16.mxu1 %v1080_v16 }
 0x16b   : > { %742 = vmatmul.mubr.bf16.gmra.mxu1 %v1082_v17 }
 0x16c   : > { %749 = vmatprep.mubr.bf16.mxu1 %v1083_v18 }
 0x173   : > { %750 = vmatmul.mubr.bf16.gmra.mxu1 %v1085_v19 }
 0x174   : > { %757 = vmatprep.mubr.bf16.mxu1 %v1086_v20 }
 0x17b   : > { %758 = vmatmul.mubr.bf16.gmra.mxu1 %v1088_v21 }
 0x17c   : > { %765 = vmatprep.mubr.bf16.mxu1 %v1089_v22 }
 0x183   : > { %766 = vmatmul.mubr.bf16.gmra.mxu1 %v1091_v23 }
 0x20b   : > { %v940_v24 = vpop.f32.mrf.mxu1 }
 0x20d   : > { %v941_v26 = vpop.f32.mrf.mxu1 }
 0x20e   : > { %v942_v27 = vadd.f32 %v941_v26, %v940_v24 }
 0x20f   : > { %v943_v28 = vpop.f32.mrf.mxu1 }
 0x210   : > { %v712_v29 = vadd.f32 %v942_v27, %v1239_v25 }
 0x211   : > { %v944_v30 = vpop.f32.mrf.mxu1 }
 0x212   : > { %774 = vst [vmem:[%s1246_s25] sm:$0xff] %v712_v29  ;;  %v945_v31 = vadd.f32 %v944_v30, %v943_v28 }
 0x213   : > { %v946_v32 = vpop.f32.mrf.mxu1 }
 0x214   : > { %v715_v33 = vadd.f32 %v945_v31, %v1239_v25 }
 0x215   : > { %v947_v34 = vpop.f32.mrf.mxu1 }
 0x216   : > { %775 = vst [vmem:[%s1246_s25 + $0x8] sm:$0xff] %v715_v33  ;;  %v948_v35 = vadd.f32 %v947_v34, %v946_v32 }
 0x217   : > { %v949_v36 = vpop.f32.mrf.mxu1 }
 0x218   : > { %v720_v37 = vadd.f32 %v948_v35, %v1239_v25 }
 0x219   : > { %v950_v38 = vpop.f32.mrf.mxu1 }
 0x21a   : > { %776 = vst [vmem:[%s1246_s25 + $0x10] sm:$0xff] %v720_v37  ;;  %v951_v39 = vadd.f32 %v950_v38, %v949_v36 }
 0x21b   : > { %v952_v40 = vpop.f32.mrf.mxu1 }
 0x21c   : > { %v723_v41 = vadd.f32 %v951_v39, %v1239_v25 }
 0x21d   : > { %v953_v42 = vpop.f32.mrf.mxu1 }
 0x21e   : > { %777 = vst [vmem:[%s1246_s25 + $0x18] sm:$0xff] %v723_v41  ;;  %v954_v43 = vadd.f32 %v953_v42, %v952_v40 }
 0x21f   : > { %v955_v44 = vpop.f32.mrf.mxu1 }
 0x220   : > { %v728_v45 = vadd.f32 %v954_v43, %v1239_v25 }
 0x221   : > { %v956_v46 = vpop.f32.mrf.mxu1 }
 0x222   : > { %778 = vst [vmem:[%s1246_s25 + $0x20] sm:$0xff] %v728_v45  ;;  %v957_v47 = vadd.f32 %v956_v46, %v955_v44 }
 0x223   : > { %v958_v48 = vpop.f32.mrf.mxu1 }
 0x224   : > { %v731_v49 = vadd.f32 %v957_v47, %v1239_v25 }
 0x225   : > { %v959_v50 = vpop.f32.mrf.mxu1 }
 0x226   : > { %779 = vst [vmem:[%s1246_s25 + $0x28] sm:$0xff] %v731_v49  ;;  %v960_v51 = vadd.f32 %v959_v50, %v958_v48 }
 0x227   : > { %v961_v52 = vpop.f32.mrf.mxu1 }
 0x228   : > { %v736_v53 = vadd.f32 %v960_v51, %v1239_v25 }
 0x229   : > { %v962_v54 = vpop.f32.mrf.mxu1 }
 0x22a   : > { %780 = vst [vmem:[%s1246_s25 + $0x30] sm:$0xff] %v736_v53  ;;  %v963_v55 = vadd.f32 %v962_v54, %v961_v52 }
 0x22b   : > { %v964_v56 = vpop.f32.mrf.mxu1 }
 0x22c   : > { %v739_v57 = vadd.f32 %v963_v55, %v1239_v25 }
 0x22d   : > { %v965_v58 = vpop.f32.mrf.mxu1 }
 0x22e   : > { %781 = vst [vmem:[%s1246_s25 + $0x38] sm:$0xff] %v739_v57  ;;  %v966_v59 = vadd.f32 %v965_v58, %v964_v56 }
 0x22f   : > { %v967_v60 = vpop.f32.mrf.mxu1 }
 0x230   : > { %v744_v61 = vadd.f32 %v966_v59, %v1239_v25 }
 0x231   : > { %v968_v62 = vpop.f32.mrf.mxu1 }
 0x232   : > { %782 = vst [vmem:[%s1246_s25 + $0x40] sm:$0xff] %v744_v61  ;;  %v969_v63 = vadd.f32 %v968_v62, %v967_v60 }
 0x233   : > { %v970_v0 = vpop.f32.mrf.mxu1 }
 0x234   : > { %v747_v1 = vadd.f32 %v969_v63, %v1239_v25 }
 0x235   : > { %v971_v2 = vpop.f32.mrf.mxu1 }
 0x236   : > { %783 = vst [vmem:[%s1246_s25 + $0x48] sm:$0xff] %v747_v1  ;;  %v972_v3 = vadd.f32 %v971_v2, %v970_v0 }
 0x237   : > { %v973_v4 = vpop.f32.mrf.mxu1 }
 0x238   : > { %v752_v5 = vadd.f32 %v972_v3, %v1239_v25 }
 0x239   : > { %v974_v6 = vpop.f32.mrf.mxu1 }
 0x23a   : > { %784 = vst [vmem:[%s1246_s25 + $0x50] sm:$0xff] %v752_v5  ;;  %v975_v7 = vadd.f32 %v974_v6, %v973_v4 }
 0x23b   : > { %v976_v8 = vpop.f32.mrf.mxu1 }
 0x23c   : > { %v755_v9 = vadd.f32 %v975_v7, %v1239_v25 }
 0x23d   : > { %v977_v10 = vpop.f32.mrf.mxu1 }
 0x23e   : > { %785 = vst [vmem:[%s1246_s25 + $0x58] sm:$0xff] %v755_v9  ;;  %v978_v11 = vadd.f32 %v977_v10, %v976_v8 }
 0x23f   : > { %v979_v12 = vpop.f32.mrf.mxu1 }
 0x240   : > { %v760_v13 = vadd.f32 %v978_v11, %v1239_v25 }
 0x241   : > { %v980_v14 = vpop.f32.mrf.mxu1 }
 0x242   : > { %786 = vst [vmem:[%s1246_s25 + $0x60] sm:$0xff] %v760_v13  ;;  %v981_v15 = vadd.f32 %v980_v14, %v979_v12 }
 0x243   : > { %v982_v16 = vpop.f32.mrf.mxu1 }
 0x244   : > { %v763_v17 = vadd.f32 %v981_v15, %v1239_v25 }
 0x245   : > { %v983_v18 = vpop.f32.mrf.mxu1 }
 0x246   : > { %787 = vst [vmem:[%s1246_s25 + $0x68] sm:$0xff] %v763_v17  ;;  %v984_v19 = vadd.f32 %v983_v18, %v982_v16 }
 0x247   : > { %v985_v20 = vpop.f32.mrf.mxu1 }
 0x248   : > { %v768_v21 = vadd.f32 %v984_v19, %v1239_v25 }
 0x249   : > { %v986_v22 = vpop.f32.mrf.mxu1 }
 0x24a   : > { %788 = vst [vmem:[%s1246_s25 + $0x70] sm:$0xff] %v768_v21  ;;  %v987_v23 = vadd.f32 %v986_v22, %v985_v20 }
 0x24c   : > { %v771_v24 = vadd.f32 %v987_v23, %v1239_v25 }
 0x24e   : > { %789 = vst [vmem:[%s1246_s25 + $0x78] sm:$0xff] %v771_v24 }
 0x24f PF: > { %s14_s15 = sadd.s32 1, %s1098_s15  }
 0x250   : > { %p11_p4 = scmp.ge.s32.totalorder %s14_s15, 4  }
 0x252   :  { %13 = sbr.rel (!%p11_p4) target bundleno = 1 (0x1), region = 66 }

</bundles_post_ra>
